<compile_context>
chip_gen: v7x
topology: tpu7x:2x2x1
jax: 0.10.0
libtpu: 0.0.40
codegen_flags: <defaults>
</compile_context>

<pallas_src>
from functools import partial

import numpy as np
import jax
import jax.numpy as jnp
from jax.experimental import pallas as pl
from jax.experimental.pallas import tpu as pltpu

zeroTolerance = 1e-07


# ----------------------------- graph utilities (plain numpy glue) -----------
def adj_to_p(adj):
    d = np.sum(adj, axis=1)
    kill = np.nonzero(d < zeroTolerance)[0]
    d_ready = d.copy()
    d_ready[kill] = 1.0
    d_inv = 1.0 / d_ready
    d_inv[kill] = 0.0
    Dinv = np.diag(d_inv)
    P = 0.5 * (np.eye(adj.shape[0]) + adj.dot(Dinv))
    return P.astype(np.float32)


def p_powers1(P, J):
    N = P.shape[0]
    out = [np.eye(N, dtype=np.float32)]
    for j in range(1, J):
        out.append(np.linalg.matrix_power(P, 2 ** (j - 1)).astype(np.float32))
    return np.stack(out, axis=0)


def p_powers2(P, J):
    out = [P.astype(np.float32)]
    for j in range(1, J):
        out.append(np.linalg.matrix_power(P, 2 ** j).astype(np.float32))
    return np.stack(out, axis=0)


# ----------------------------- Pallas kernel --------------------------------
def _make_stgst_kernel(L, Js, Jt, F, Nt, Ns):
    """Lane-dense scattering tree for one batch element.

    Kernel args:
      x_ref   : (1, Ns, F*Nt)            input, columns ordered (f, t)
      hs_ref  : (Js*Ns, Ns)              rows (s, n): Hs[(s,n), n'] = H_space[s, n', n]
      T_l^T   : (P*F*Nt, P*Jt*F*Nt)      per layer l = 1..L-1, P = J^(l-1)
      out_l   : (1, Js*Ns, P*Jt*F*Nt)    per layer l = 1..L-1
                rows (s, n), columns (q_phys, ts, f, u)
    """

    def kernel(x_ref, hs_ref, *rest):
        t_refs = rest[:L - 1]
        out_refs = rest[L - 1:]

        hsT = hs_ref[...]                        # (Js*Ns, Ns), resident
        slab = x_ref[0]                          # (Ns, F*Nt), cols (f, t)

        for l in range(1, L):                    # static unroll over layers
            TlT = t_refs[l - 1][...]             # (P*F*Nt, P*Jt*F*Nt)

            # Temporal wavelets for ALL parents / features / temporal scales:
            # one MXU matmul with a lane-dense (P*Jt*F*Nt)-wide result.
            xt = jnp.dot(slab, TlT, preferred_element_type=jnp.float32)

            # ALL Js spatial wavelets in one matmul, then rho = |.|.
            ys = jnp.abs(jnp.dot(hsT, xt, preferred_element_type=jnp.float32))

            # Single bulk (unmasked for wide layers) store of the whole layer.
            out_refs[l - 1][0] = ys.astype(out_refs[l - 1].dtype)

            if l + 1 < L:
                # Next layer's parents: move the Js row blocks into the lane
                # (column) axis so the growing axis stays lane-dense.
                # Physical child order becomes (s, q_phys, ts); the wrapper
                # un-permutes to the canonical (q, s, ts) order.
                slab = jnp.concatenate(
                    [ys[s * Ns:(s + 1) * Ns, :] for s in range(Js)], axis=1)

    return kernel


# ----------------------------- wrapper ---------------------------------------
@partial(jax.jit, static_argnames=("L",))
def stgst_forward(x, H_space, H_time, L):
    """Full STGSTModule.forward: returns (Phi, nextRhoHx)."""
    B, F, Nt, Ns = x.shape
    Js = H_space.shape[0]
    Jt = H_time.shape[0]
    J = Js * Jt
    N_tree = sum(J ** l for l in range(L))
    dtype = x.dtype

    if L == 1:
        rho = x[:, None]
        return jnp.mean(rho, axis=3), rho

    # --- kernel operands, laid out lane-dense ------------------------------
    # x^T : (B, Ns, F*Nt), columns ordered (f, t)
    xT = jnp.transpose(x, (0, 3, 1, 2)).reshape(B, Ns, F * Nt)

    # All spatial wavelets stacked row-wise: HsT[(s, n), n'] = H_space[s, n', n]
    HsT = jnp.transpose(H_space, (0, 2, 1)).reshape(Js * Ns, Ns).astype(dtype)

    # Per-parent temporal operator (right-multiplied):
    #   BT[(f, t'), (ts, f', u)] = delta_{ff'} * H_time[ts, t', u]
    eyeF = jnp.eye(F, dtype=jnp.float32)
    B_mat = jnp.concatenate([jnp.kron(eyeF, H_time[t].T) for t in range(Jt)],
                            axis=0)                          # (Jt*F*Nt, F*Nt)
    BT = B_mat.T                                             # (F*Nt, Jt*F*Nt)
    # Block-diagonal per-layer temporal operators T_l^T = kron(I_{J^(l-1)}, BT).
    T_mats = [jnp.kron(jnp.eye(J ** (l - 1), dtype=jnp.float32), BT).astype(dtype)
              for l in range(1, L)]

    kernel = _make_stgst_kernel(L, Js, Jt, F, Nt, Ns)

    in_specs = [
        pl.BlockSpec((1, Ns, F * Nt), lambda b: (b, 0, 0)),   # x^T, one batch
        pl.BlockSpec((Js * Ns, Ns), lambda b: (0, 0)),        # HsT, resident
    ]
    in_specs += [pl.BlockSpec(T.shape, lambda b: (0, 0)) for T in T_mats]

    out_shapes = tuple(
        jax.ShapeDtypeStruct((B, Js * Ns, (J ** (l - 1)) * Jt * F * Nt), dtype)
        for l in range(1, L))
    out_specs = tuple(
        pl.BlockSpec((1,) + s.shape[1:], lambda b: (b, 0, 0)) for s in out_shapes)

    # Advisory cost estimate (per-batch tree, scaled by B).
    flops = 0
    for l in range(1, L):
        P = J ** (l - 1)
        cols = P * Jt * F * Nt
        flops += 2 * Ns * (P * F * Nt) * cols        # temporal matmul
        flops += 2 * (Js * Ns) * Ns * cols           # spatial matmul
    flops *= B
    itemsize = np.dtype(dtype).itemsize
    bytes_accessed = itemsize * (
        xT.size + HsT.size + sum(int(T.size) for T in T_mats)
        + sum(int(np.prod(s.shape)) for s in out_shapes))

    layer_slabs = pl.pallas_call(
        kernel,
        out_shape=out_shapes,
        grid_spec=pltpu.PrefetchScalarGridSpec(
            num_scalar_prefetch=0,
            grid=(B,),
            in_specs=in_specs,
            out_specs=out_specs),
        compiler_params=pltpu.CompilerParams(
            dimension_semantics=("parallel",),       # 2-way TC sharding on v7x
            vmem_limit_bytes=32 * 1024 * 1024),
        cost_estimate=pl.CostEstimate(flops=int(flops), transcendentals=0,
                                      bytes_accessed=int(bytes_accessed)),
    )(xT, HsT, *T_mats)

    # --- reassemble the canonical NC(T)(V) outputs (tiny wrapper-side ops) --
    # Kernel-physical child order within layer l is (s, q_phys, ts);
    # canonical (PyTorch-loop) order is (q_canon, s, ts).
    phys2canon = [np.zeros(1, dtype=np.int64)]
    for l in range(1, L):
        prev = phys2canon[-1]
        P = prev.shape[0]
        cur = np.empty(P * J, dtype=np.int64)
        for s in range(Js):
            for q in range(P):
                for ts in range(Jt):
                    cur[s * (P * Jt) + q * Jt + ts] = prev[q] * J + s * Jt + ts
        phys2canon.append(cur)

    rho_layers = [x[:, None]]                              # layer 0: root node
    for l in range(1, L):
        P = J ** (l - 1)
        slab = layer_slabs[l - 1]                          # (B, Js*Ns, P*Jt*F*Nt)
        slab = slab.reshape(B, Js, Ns, P, Jt, F, Nt)
        slab = jnp.transpose(slab, (0, 1, 3, 4, 5, 6, 2))  # (B, s, q, ts, f, u, n)
        slab = slab.reshape(B, Js * P * Jt, F, Nt, Ns)     # children, phys order
        canon_to_phys = np.argsort(phys2canon[l])
        rho_layers.append(slab[:, canon_to_phys])

    nextRhoHx = jnp.concatenate(rho_layers, axis=1)        # (B, N_tree, F, Nt, Ns)
    assert nextRhoHx.shape == (B, N_tree, F, Nt, Ns)
    Phi = jnp.mean(nextRhoHx, axis=3)                      # (B, N_tree, F, Ns)
    return Phi, nextRhoHx


# ----------------------------- pure-JAX reference (for verification) --------
def reference_forward(x, H_space, H_time, L):
    Js, Jt = H_space.shape[0], H_time.shape[0]
    J = Js * Jt
    phi = [jnp.mean(x, axis=2)]
    rho = [x]
    start = 0
    for l in range(1, L):
        n_par = J ** (l - 1)
        for j in range(n_par):
            thisX = rho[start + j]                                  # (B,F,Nt,Ns)
            for s in range(Js):
                xs = jnp.matmul(thisX, H_space[s])                  # (B,F,Nt,Ns)
                gst = jnp.transpose(xs, (0, 3, 1, 2))[:, :, None]   # (B,Ns,1,F,Nt)
                r = jnp.abs(jnp.matmul(gst, H_time))                # (B,Ns,Jt,F,Nt)
                r = jnp.transpose(r, (0, 2, 3, 4, 1))               # (B,Jt,F,Nt,Ns)
                for t in range(Jt):
                    rho.append(r[:, t])
                    phi.append(jnp.mean(r[:, t], axis=2))
        start += n_par
    return jnp.stack(phi, axis=1), jnp.stack(rho, axis=1)


# ----------------------------- main ------------------------------------------
if __name__ == "__main__":
    # Small, module-consistent sizes
    B, F = 2, 4
    N_space, N_time = 16, 8
    J_space, J_time, L = 2, 2, 3
    J = J_space * J_time
    N_tree_nodes = sum(J ** l for l in range(L))   # 1 + 4 + 16 = 21

    # Deterministic adjacency matrices (ring graphs)
    W_space = np.zeros((N_space, N_space), dtype=np.float64)
    for i in range(N_space):
        W_space[i, (i + 1) % N_space] = 1.0
        W_space[i, (i - 1) % N_space] = 1.0
    W_time = np.zeros((N_time, N_time), dtype=np.float64)
    for i in range(N_time):
        W_time[i, (i + 1) % N_time] = 1.0
        W_time[i, (i - 1) % N_time] = 1.0

    # Parameters (nn.Parameter(torch.ones(...)) in the module)
    a_space = np.ones((J_space, 1, 1), dtype=np.float32)
    b_space = np.ones((J_space, 1, 1), dtype=np.float32)
    a_time = np.ones((J_time, 1, 1), dtype=np.float32)
    b_time = np.ones((J_time, 1, 1), dtype=np.float32)

    # Lazy diffusion operators and their dyadic powers (H = a*P1 - b*P2)
    P_space = adj_to_p(W_space)
    P_time = adj_to_p(W_time)
    H_space_np = a_space * p_powers1(P_space, J_space) - b_space * p_powers2(P_space, J_space)
    H_time_np = a_time * p_powers1(P_time, J_time) - b_time * p_powers2(P_time, J_time)

    H_space = jnp.asarray(H_space_np, dtype=jnp.float32)
    H_time = jnp.asarray(H_time_np, dtype=jnp.float32)

    key = jax.random.PRNGKey(0)
    x = jax.random.normal(key, (B, F, N_time, N_space), dtype=jnp.float32)

    Phi, nextRhoHx = stgst_forward(x, H_space, H_time, L)
    jax.block_until_ready((Phi, nextRhoHx))

    assert Phi.shape == (B, N_tree_nodes, F, N_space)
    assert nextRhoHx.shape == (B, N_tree_nodes, F, N_time, N_space)

    # Verify against a pure-JAX transcription of the PyTorch forward
    Phi_ref, Rho_ref = reference_forward(x, H_space, H_time, L)
    np.testing.assert_allclose(np.asarray(Phi), np.asarray(Phi_ref),
                               rtol=1e-4, atol=1e-5)
    np.testing.assert_allclose(np.asarray(nextRhoHx), np.asarray(Rho_ref),
                               rtol=1e-4, atol=1e-5)

    print("KERNEL_OK")
</pallas_src>

<mosaic_0001>
module attributes {stable_mosaic.version = 11 : i64} {
  func.func @kernel(%arg0: i32, %arg1: memref<1x16x32xf32, #tpu.memory_space<vmem>>, %arg2: memref<32x16xf32, #tpu.memory_space<vmem>>, %arg3: memref<32x64xf32, #tpu.memory_space<vmem>>, %arg4: memref<128x256xf32, #tpu.memory_space<vmem>>, %arg5: memref<1x32x64xf32, #tpu.memory_space<vmem>>, %arg6: memref<1x32x256xf32, #tpu.memory_space<vmem>>) attributes {dimension_semantics = [#tpu.dimension_semantics<parallel>], iteration_bounds = array<i64: 2>, scalar_prefetch = 0 : i64, scratch_operands = 0 : i64, tpu.core_type = #tpu.core_type<tc>, window_params = [{transform_indices = @transform_0, window_bounds = array<i64: 1, 16, 32>}, {pipeline_mode = #tpu.pipeline_mode<synchronous>, transform_indices = @transform_1, window_bounds = array<i64: 32, 16>}, {pipeline_mode = #tpu.pipeline_mode<synchronous>, transform_indices = @transform_2, window_bounds = array<i64: 32, 64>}, {pipeline_mode = #tpu.pipeline_mode<synchronous>, transform_indices = @transform_3, window_bounds = array<i64: 128, 256>}, {transform_indices = @transform_4, window_bounds = array<i64: 1, 32, 64>}, {transform_indices = @transform_5, window_bounds = array<i64: 1, 32, 256>}]} {
    %c0 = arith.constant 0 : index
    %c0_0 = arith.constant 0 : index
    %0 = vector.load %arg2[%c0, %c0_0] : memref<32x16xf32, #tpu.memory_space<vmem>>, vector<32x16xf32>
    %c0_1 = arith.constant 0 : index
    %c0_2 = arith.constant 0 : index
    %c0_3 = arith.constant 0 : index
    %1 = vector.load %arg1[%c0_1, %c0_2, %c0_3] : memref<1x16x32xf32, #tpu.memory_space<vmem>>, vector<1x16x32xf32>
    %2 = vector.shape_cast %1 : vector<1x16x32xf32> to vector<16x32xf32>
    %c0_4 = arith.constant 0 : index
    %c0_5 = arith.constant 0 : index
    %3 = vector.load %arg3[%c0_4, %c0_5] : memref<32x64xf32, #tpu.memory_space<vmem>>, vector<32x64xf32>
    %cst = arith.constant dense<0.000000e+00> : vector<16x64xf32>
    %4 = tpu.matmul %2, %3, %cst {dimension_numbers = #tpu.dot_dimension_numbers<[1], [0], [0], [1], [0, 0, 1, 1], [], []>} : vector<16x32xf32>, vector<32x64xf32>, vector<16x64xf32> -> vector<16x64xf32>
    %cst_6 = arith.constant dense<0.000000e+00> : vector<32x64xf32>
    %5 = tpu.matmul %0, %4, %cst_6 {dimension_numbers = #tpu.dot_dimension_numbers<[1], [0], [0], [1], [0, 0, 1, 1], [], []>} : vector<32x16xf32>, vector<16x64xf32>, vector<32x64xf32> -> vector<32x64xf32>
    %6 = math.absf %5 : vector<32x64xf32>
    %c0_7 = arith.constant 0 : index
    %c0_8 = arith.constant 0 : index
    %c0_9 = arith.constant 0 : index
    %7 = vector.load %arg5[%c0_7, %c0_8, %c0_9] : memref<1x32x64xf32, #tpu.memory_space<vmem>>, vector<1x32x64xf32>
    %8 = vector.shape_cast %7 : vector<1x32x64xf32> to vector<32x64xf32>
    %9 = vector.shape_cast %6 : vector<32x64xf32> to vector<1x32x64xf32>
    tpu.vector_store %arg5[%c0_7, %c0_8, %c0_9], %9 {strides = array<i32>} : memref<1x32x64xf32, #tpu.memory_space<vmem>>, vector<1x32x64xf32>,
    %10 = vector.extract_strided_slice %6 {offsets = [0, 0], sizes = [16, 64], strides = [1, 1]} : vector<32x64xf32> to vector<16x64xf32>
    %11 = vector.extract_strided_slice %6 {offsets = [16, 0], sizes = [16, 64], strides = [1, 1]} : vector<32x64xf32> to vector<16x64xf32>
    %12 = tpu.concatenate %10, %11 in 1 : vector<16x64xf32>, vector<16x64xf32> -> vector<16x128xf32>
    %c0_10 = arith.constant 0 : index
    %c0_11 = arith.constant 0 : index
    %13 = vector.load %arg4[%c0_10, %c0_11] : memref<128x256xf32, #tpu.memory_space<vmem>>, vector<128x256xf32>
    %cst_12 = arith.constant dense<0.000000e+00> : vector<16x256xf32>
    %14 = tpu.matmul %12, %13, %cst_12 {dimension_numbers = #tpu.dot_dimension_numbers<[1], [0], [0], [1], [0, 0, 1, 1], [], []>} : vector<16x128xf32>, vector<128x256xf32>, vector<16x256xf32> -> vector<16x256xf32>
    %cst_13 = arith.constant dense<0.000000e+00> : vector<32x256xf32>
    %15 = tpu.matmul %0, %14, %cst_13 {dimension_numbers = #tpu.dot_dimension_numbers<[1], [0], [0], [1], [0, 0, 1, 1], [], []>} : vector<32x16xf32>, vector<16x256xf32>, vector<32x256xf32> -> vector<32x256xf32>
    %16 = math.absf %15 : vector<32x256xf32>
    %c0_14 = arith.constant 0 : index
    %c0_15 = arith.constant 0 : index
    %c0_16 = arith.constant 0 : index
    %17 = vector.load %arg6[%c0_14, %c0_15, %c0_16] : memref<1x32x256xf32, #tpu.memory_space<vmem>>, vector<1x32x256xf32>
    %18 = vector.shape_cast %17 : vector<1x32x256xf32> to vector<32x256xf32>
    %19 = vector.shape_cast %16 : vector<32x256xf32> to vector<1x32x256xf32>
    tpu.vector_store %arg6[%c0_14, %c0_15, %c0_16], %19 {strides = array<i32>} : memref<1x32x256xf32, #tpu.memory_space<vmem>>, vector<1x32x256xf32>,
    return
  }
  func.func @transform_0(%arg0: i32) -> (i32, i32, i32) {
    %c0_i32 = arith.constant 0 : i32
    %c0_i32_0 = arith.constant 0 : i32
    %c0_i32_1 = arith.constant 0 : i32
    return %arg0, %c0_i32, %c0_i32_0 : i32, i32, i32
  }
  func.func @transform_1(%arg0: i32) -> (i32, i32) {
    %c0_i32 = arith.constant 0 : i32
    %c0_i32_0 = arith.constant 0 : i32
    %c0_i32_1 = arith.constant 0 : i32
    return %c0_i32, %c0_i32_0 : i32, i32
  }
  func.func @transform_2(%arg0: i32) -> (i32, i32) {
    %c0_i32 = arith.constant 0 : i32
    %c0_i32_0 = arith.constant 0 : i32
    %c0_i32_1 = arith.constant 0 : i32
    return %c0_i32, %c0_i32_0 : i32, i32
  }
  func.func @transform_3(%arg0: i32) -> (i32, i32) {
    %c0_i32 = arith.constant 0 : i32
    %c0_i32_0 = arith.constant 0 : i32
    %c0_i32_1 = arith.constant 0 : i32
    return %c0_i32, %c0_i32_0 : i32, i32
  }
  func.func @transform_4(%arg0: i32) -> (i32, i32, i32) {
    %c0_i32 = arith.constant 0 : i32
    %c0_i32_0 = arith.constant 0 : i32
    %c0_i32_1 = arith.constant 0 : i32
    return %arg0, %c0_i32, %c0_i32_0 : i32, i32, i32
  }
  func.func @transform_5(%arg0: i32) -> (i32, i32, i32) {
    %c0_i32 = arith.constant 0 : i32
    %c0_i32_0 = arith.constant 0 : i32
    %c0_i32_1 = arith.constant 0 : i32
    return %arg0, %c0_i32, %c0_i32_0 : i32, i32, i32
  }
}

</mosaic_0001>

<bundles_post_ra>
// kernel: stgst_forward.1
= control target key start
LH: loop header
LB: loop body
LE: loop exit
PB: predicated region body
PF: predicated region fallthrough
CT: control target
= control target key end

     0   :  { %s906_s18 = smov 0   ;;  %s1081_s0 = inlined_call_operand.vmem [shape: f32[2,16,32], index: 0, kind: input, shape index: {}]   ;;  %s1082_s1 = inlined_call_operand.vmem [shape: f32[32,16], index: 1, kind: input, shape index: {}]   ;;  %s1083_s2 = inlined_call_operand.vmem [shape: f32[32,64], index: 2, kind: input, shape index: {}]   ;;  %s1084_s3 = inlined_call_operand.vmem [shape: f32[128,256], index: 3, kind: input, shape index: {}]   ;;  %s1085_s4 = inlined_call_operand.vmem [shape: f32[2,32,64], index: 4, kind: output, shape index: {0}]   ;;  %s1086_s5 = inlined_call_operand.vmem [shape: f32[2,32,256], index: 5, kind: output, shape index: {1}]  }
   0x1 LB: > { %s749_s19 = sadd.s32 4294967295, %s872_s18   ;;  %p753_p0 = scmp.ge.s32.totalorder %s872_s18, 1  ;;  %s872_s18 = sphi %s906_s18, %s16_s18  }
   0x2   : > { %p190_p1 = scmp.lt.s32.totalorder %s872_s18, 3 }
   0x4   : > { %p191_p2 = pnand %p753_p0, %p190_p1 }
   0x5   : > { %v244_v0 = vld [vmem:[%s1083_s2] sm:$0xff] (!%p191_p2)  ;;  %v245_v1 = vld [vmem:[%s1083_s2 + $0x8] sm:$0xff] (!%p191_p2)  ;;  %v246_v2 = vld [vmem:[%s1083_s2 + $0x10] sm:$0xff] (!%p191_p2)  ;;  %p223_p3 = scmp.lt.s32.totalorder (!%p191_p2), %s749_s19, 1  ;;  %vm248_vm0 = vcmask (!%p191_p2), 261120   ;;  %vm330_vm1 = vcmask (!%p191_p2), 130048  }
   0x6   : > { %194 = sbr.rel (%p191_p2) target bundleno = 1023 (0x3ff), region = 36  ;;  %v808_v3 = vpack.c.bf16 (!%p191_p2), %v245_v1, %v244_v0  ;;  %v247_v4 = vld [vmem:[%s1083_s2 + $0x18] sm:$0xff] (!%p191_p2)  ;;  %v935_v8 = vld [vmem:[%s1082_s1] sm:$0xff] (!%p191_p2)  ;;  %v942_v12 = vld [vmem:[%s1082_s1 + $0x8] sm:$0xff] (!%p191_p2)  ;;  %v874_v63 = vmov (!%p191_p2), 0.0   ;;  %vm432_vm2 = vcmask (!%p191_p2), 523264  }
   0x7   : > { %v812_v5 = vpack.c.bf16 (!%p191_p2), %v247_v4, %v246_v2  ;;  %v947_v13 = vld [vmem:[%s1082_s1 + $0x10] sm:$0xff] (!%p191_p2)  ;;  %v956_v14 = vld [vmem:[%s1082_s1 + $0x18] sm:$0xff] (!%p191_p2)  ;;  %v448_v15 = vld [vmem:[%s1084_s3 + $0x8] sm:$0xff] (!%p191_p2)  ;;  %543 = vmatprep.mubr.f32.mxu1 (!%p191_p2), %v874_v63  ;;  %s875_s14 = smov (!%p191_p2), 64  }
   0x8   : > { %809 = vmatprep.subr.bf16.mxu0 (!%p191_p2), %v808_v3  ;;  %v450_v16 = vld [vmem:[%s1084_s3 + $0x18] sm:$0xff] (!%p191_p2)  ;;  %v447_v17 = vld [vmem:[%s1084_s3] sm:$0xff] (!%p191_p2)  ;;  %v449_v19 = vld [vmem:[%s1084_s3 + $0x10] sm:$0xff] (!%p191_p2) }
   0x9   : > { %811 = vmatpush3.bf16.msra.mxu0 (!%p191_p2), %v808_v3  ;;  %v820_v18 = vpack.c.bf16 (!%p191_p2), %v450_v16, %v448_v15  ;;  %v452_v20 = vld [vmem:[%s1084_s3 + $0x28] sm:$0xff] (!%p191_p2)  ;;  %v454_v21 = vld [vmem:[%s1084_s3 + $0x38] sm:$0xff] (!%p191_p2)  ;;  %v822_v22 = vpack.c.bf16 (!%p191_p2), %v449_v19, %v447_v17  ;;  %v451_v24 = vld [vmem:[%s1084_s3 + $0x20] sm:$0xff] (!%p191_p2) }
   0xa   : > { %813 = vmatprep.subr.bf16.mxu0 (!%p191_p2), %v812_v5  ;;  %v824_v23 = vpack.c.bf16 (!%p191_p2), %v454_v21, %v452_v20  ;;  %v453_v25 = vld [vmem:[%s1084_s3 + $0x30] sm:$0xff] (!%p191_p2)  ;;  %v456_v26 = vld [vmem:[%s1084_s3 + $0x48] sm:$0xff] (!%p191_p2)  ;;  %v458_v27 = vld [vmem:[%s1084_s3 + $0x58] sm:$0xff] (!%p191_p2) }
   0xb   : > { %821 = vmatprep.subr.bf16.mxu1 (!%p191_p2), %v820_v18  ;;  %v826_v28 = vpack.c.bf16 (!%p191_p2), %v453_v25, %v451_v24  ;;  %v828_v29 = vpack.c.bf16 (!%p191_p2), %v458_v27, %v456_v26  ;;  %v455_v30 = vld [vmem:[%s1084_s3 + $0x40] sm:$0xff] (!%p191_p2)  ;;  %v457_v31 = vld [vmem:[%s1084_s3 + $0x50] sm:$0xff] (!%p191_p2)  ;;  %v460_v32 = vld [vmem:[%s1084_s3 + $0x68] sm:$0xff] (!%p191_p2) }
   0xc   : > { %823 = vmatpush1.bf16.msra.mxu1 (!%p191_p2), %v822_v22  ;;  %v462_v33 = vld [vmem:[%s1084_s3 + $0x78] sm:$0xff] (!%p191_p2)  ;;  %v830_v34 = vpack.c.bf16 (!%p191_p2), %v457_v31, %v455_v30  ;;  %v459_v36 = vld [vmem:[%s1084_s3 + $0x60] sm:$0xff] (!%p191_p2)  ;;  %v461_v37 = vld [vmem:[%s1084_s3 + $0x70] sm:$0xff] (!%p191_p2) }
   0xd   : > { %s1088_s19 = smov (!%p223_p3, %s749_s19), 1  ;;  %815 = vmatpush3.bf16.msra.mxu0 %v812_v5  ;;  %825 = vmatprep.subr.bf16.mxu1 %v824_v23  ;;  %v832_v35 = vpack.c.bf16 %v462_v33, %v460_v32  ;;  %v464_v38 = vld [vmem:[%s1084_s3 + $0x88] sm:$0xff]  ;;  %v466_v39 = vld [vmem:[%s1084_s3 + $0x98] sm:$0xff]  ;;  %v834_v40 = vpack.c.bf16 %v461_v37, %v459_v36  ;;  %v463_v42 = vld [vmem:[%s1084_s3 + $0x80] sm:$0xff] }
   0xe   : > { %s772_s28 = sshll.u32 %s1088_s19, 4  ;;  %v836_v41 = vpack.c.bf16 %v466_v39, %v464_v38  ;;  %v465_v43 = vld [vmem:[%s1084_s3 + $0x90] sm:$0xff]  ;;  %v468_v44 = vld [vmem:[%s1084_s3 + $0xa8] sm:$0xff]  ;;  %v470_v45 = vld [vmem:[%s1084_s3 + $0xb8] sm:$0xff]  ;;  %s773_s10 = sshll.u32 %s1088_s19, 5 }
   0xf   : > { %s227_s6 = scalar_lea.vmem %s1081_s0, %s772_s28  ;;  %v838_v46 = vpack.c.bf16 %v465_v43, %v463_v42  ;;  %v840_v47 = vpack.c.bf16 %v470_v45, %v468_v44  ;;  %v467_v48 = vld [vmem:[%s1084_s3 + $0xa0] sm:$0xff]  ;;  %v469_v49 = vld [vmem:[%s1084_s3 + $0xb0] sm:$0xff]  ;;  %v472_v50 = vld [vmem:[%s1084_s3 + $0xc8] sm:$0xff]  ;;  %s232_s13 = scalar_lea.vmem %s1085_s4, %s773_s10 }
  0x10   : > { %v242_v6 = vld [vmem:[%s227_s6] sm:$0xff]  ;;  %v243_v7 = vld [vmem:[%s227_s6 + $0x8] sm:$0xff]  ;;  %827 = vmatpush1.bf16.msra.mxu1 %v826_v28  ;;  %v474_v51 = vld [vmem:[%s1084_s3 + $0xd8] sm:$0xff]  ;;  %v842_v52 = vpack.c.bf16 %v469_v49, %v467_v48  ;;  %s774_s15 = sshll.u32 %s1088_s19, 6 }
  0x11   : > { %795 = vmatprep.mubr.msk.f32.mxu0 %vm248_vm0, %v242_v6  ;;  %829 = vmatprep.subr.bf16.mxu1 %v828_v29  ;;  %v844_v53 = vpack.c.bf16 %v474_v51, %v472_v50  ;;  %v471_v54 = vld [vmem:[%s1084_s3 + $0xc0] sm:$0xff]  ;;  %v473_v55 = vld [vmem:[%s1084_s3 + $0xd0] sm:$0xff]  ;;  %v476_v56 = vld [vmem:[%s1084_s3 + $0xe8] sm:$0xff]  ;;  %s237_s20 = scalar_lea.vmem %s1086_s5, %s774_s15 }
  0x12   : > { %796 = vmatmul.mubr.msk.f32.vlgmr.msra.gmra.mrb[0].mxu0 %vm248_vm0, %v243_v7  ;;  %v478_v57 = vld [vmem:[%s1084_s3 + $0xf8] sm:$0xff]  ;;  %v846_v58 = vpack.c.bf16 %v473_v55, %v471_v54  ;;  %v475_v60 = vld [vmem:[%s1084_s3 + $0xe0] sm:$0xff]  ;;  %v477_v61 = vld [vmem:[%s1084_s3 + $0xf0] sm:$0xff] }
  0x13   : > { %802 = vmatprep.mubr.msk.f32.mxu0 %vm330_vm1, %v935_v8  ;;  %v848_v59 = vpack.c.bf16 %v478_v57, %v476_v56  ;;  %v850_v62 = vpack.c.bf16 %v477_v61, %v475_v60 }
  0x14   : > { %831 = vmatpush1.bf16.msra.mxu1 %v830_v34 }
  0x15   : > { %833 = vmatprep.subr.bf16.mxu1 %v832_v35 }
  0x18   : > { %835 = vmatpush1.bf16.msra.mxu1 %v834_v40 }
  0x19   : > { %837 = vmatprep.subr.bf16.mxu1 %v836_v41 }
  0x1c   : > { %839 = vmatpush1.bf16.msra.mxu1 %v838_v46 }
  0x1d   : > { %841 = vmatprep.subr.bf16.mxu1 %v840_v47 }
  0x20   : > { %843 = vmatpush1.bf16.msra.mxu1 %v842_v52 }
  0x21   : > { %845 = vmatprep.subr.bf16.mxu1 %v844_v53 }
  0x24   : > { %847 = vmatpush1.bf16.msra.mxu1 %v846_v58 }
  0x25   : > { %849 = vmatprep.subr.bf16.mxu1 %v848_v59 }
  0x28   : > { %851 = vmatpush1.bf16.msra.mxu1 %v850_v62 }
  0xe5   : > { %v797_v9 = vpop.f32.mrb[0].mxu0 }
  0xe6   : > { %v321_v10 = vpop.f32.mrb[1].mxu0 }
  0xe7   : > { %v816_v11 = vpack.c.bf16 %v797_v9, %v321_v10 }
  0xe9   : > { %817 = vmatprep.subr.bf16.mxu0 %v816_v11 }
  0xea   : > { %819 = vmatpush3.bf16.msra.mxu0 %v816_v11 }
  0xed   : > { %803 = vmatmul.mubr.msk.f32.vlgmr.msra.gmra.mrb[2].mxu0 %vm330_vm1, %v942_v12 }
  0xee   : > { %805 = vmatprep.mubr.msk.f32.mxu0 %vm330_vm1, %v947_v13 }
  0xf1   : > { %806 = vmatmul.mubr.msk.f32.gmra.mrb[4].mxu0 %vm330_vm1, %v956_v14 }
  0xf2   : > { %620 = vmatprep.mubr.f32.mxu0 %v874_v63 }
 0x1c0   : > { %v804_v0 = vpop.f32.mrb[2].mxu0 }
 0x1c1   : > { %v429_v1 = vand.u32 2147483647, %v804_v0  ;;  %v409_v2 = vpop.f32.mrb[3].mxu0 }
 0x1c2   : > { %v428_v3 = vand.u32 2147483647, %v409_v2 }
 0x1c3   : > { %434 = vst.msk [vmem:[%s232_s13 + $0x8] sm:$0xff] %vm432_vm2, %v429_v1 }
 0x1c4   : > { %433 = vst.msk [vmem:[%s232_s13] sm:$0xff] %vm432_vm2, %v428_v3  ;;  %v807_v4 = vpop.f32.mrb[4].mxu0 }
 0x1c5   : > { %v431_v5 = vand.u32 2147483647, %v807_v4  ;;  %v419_v6 = vpop.f32.mrb[5].mxu0 }
 0x1c6   : > { %v430_v7 = vand.u32 2147483647, %v419_v6 }
 0x1c7   : > { %436 = vst.msk [vmem:[%s232_s13 + $0x18] sm:$0xff] %vm432_vm2, %v431_v5 }
 0x1c8   : > { %435 = vst.msk [vmem:[%s232_s13 + $0x10] sm:$0xff] %vm432_vm2, %v430_v7  ;;  %439 = vrot.lane.b32.xlu0 %v430_v7, %s875_s14 }
 0x1cc   : > { %441 = vrot.lane.b32.xlu0 %v431_v5, %s875_s14 }
 0x23a   : > { %v440_v9 = vpop.permute.xlu0 %439 }
 0x23b   : > { %v445_v10 = vsel %vm432_vm2, %v428_v3, %v440_v9 }
 0x23c   : > { %544 = vmatmul.mubr.f32.vlgmr.msra.gmra.mrb[0].mxu1 %v445_v10 }
 0x23d   : > { %549 = vmatprep.mubr.f32.mxu1 %v874_v63 }
 0x23e   : > { %v442_v11 = vpop.permute.xlu0 %441 }
 0x23f   : > { %v446_v15 = vsel %vm432_vm2, %v429_v1, %v442_v11 }
 0x240   : > { %550 = vmatmul.mubr.f32.gmra.mrb[2].mxu1 %v446_v15 }
 0x30f   : > { %v545_v16 = vpop.f32.mrb[0].mxu1 }
 0x310   : > { %v547_v17 = vpop.f32.mrb[1].mxu1 }
 0x313   : > { %v551_v18 = vpop.f32.mrb[2].mxu1 }
 0x314   : > { %v854_v19 = vpack.c.bf16 %v551_v18, %v545_v16  ;;  %v553_v20 = vpop.f32.mrb[3].mxu1 }
 0x315   : > { %v852_v21 = vpack.c.bf16 %v553_v20, %v547_v17 }
 0x317   : > { %853 = vmatprep.subr.bf16.mxu0 %v852_v21 }
 0x318   : > { %855 = vmatpush1.bf16.msra.mxu0 %v854_v19 }
 0x31b   : > { %766 = vmatmul.mubr.msk.f32.vlgmr.msra.gmra.mrb[6].mxu0 %vm330_vm1, %v935_v8 }
 0x31c   : > { %626 = vmatprep.mubr.f32.mxu0 %v874_v63 }
 0x31f   : > { %767 = vmatmul.mubr.msk.f32.gmra.mrb[8].mxu0 %vm330_vm1, %v942_v12 }
 0x320   : > { %632 = vmatprep.mubr.f32.mxu0 %v874_v63 }
 0x323   : > { %768 = vmatmul.mubr.msk.f32.gmra.mrb[10].mxu0 %vm330_vm1, %v947_v13 }
 0x324   : > { %638 = vmatprep.mubr.f32.mxu0 %v874_v63 }
 0x327   : > { %769 = vmatmul.mubr.msk.f32.gmra.mrb[12].mxu0 %vm330_vm1, %v956_v14 }
 0x3ee   : > { %v622_v22 = vpop.f32.mrb[6].mxu0 }
 0x3ef   : > { %v645_v23 = vand.u32 2147483647, %v622_v22  ;;  %v624_v8 = vpop.f32.mrb[7].mxu0 }
 0x3f0   : > { %v646_v24 = vand.u32 2147483647, %v624_v8 }
 0x3f1   : > { %653 = vst [vmem:[%s237_s20] sm:$0xff] %v645_v23 }
 0x3f2   : > { %654 = vst [vmem:[%s237_s20 + $0x8] sm:$0xff] %v646_v24  ;;  %v628_v12 = vpop.f32.mrb[8].mxu0 }
 0x3f3   : > { %v647_v25 = vand.u32 2147483647, %v628_v12  ;;  %v630_v26 = vpop.f32.mrb[9].mxu0 }
 0x3f4   : > { %v648_v27 = vand.u32 2147483647, %v630_v26 }
 0x3f5   : > { %655 = vst [vmem:[%s237_s20 + $0x10] sm:$0xff] %v647_v25 }
 0x3f6   : > { %656 = vst [vmem:[%s237_s20 + $0x18] sm:$0xff] %v648_v27  ;;  %v634_v13 = vpop.f32.mrb[10].mxu0 }
 0x3f7   : > { %v649_v28 = vand.u32 2147483647, %v634_v13  ;;  %v636_v14 = vpop.f32.mrb[11].mxu0 }
 0x3f8   : > { %v650_v29 = vand.u32 2147483647, %v636_v14 }
 0x3f9   : > { %657 = vst [vmem:[%s237_s20 + $0x20] sm:$0xff] %v649_v28 }
 0x3fa   : > { %658 = vst [vmem:[%s237_s20 + $0x28] sm:$0xff] %v650_v29  ;;  %v640_v30 = vpop.f32.mrb[12].mxu0 }
 0x3fb   : > { %v651_v31 = vand.u32 2147483647, %v640_v30  ;;  %v642_v32 = vpop.f32.mrb[13].mxu0 }
 0x3fc   : > { %v652_v33 = vand.u32 2147483647, %v642_v32 }
 0x3fd   : > { %659 = vst [vmem:[%s237_s20 + $0x30] sm:$0xff] %v651_v31 }
 0x3fe   : > { %660 = vst [vmem:[%s237_s20 + $0x38] sm:$0xff] %v652_v33 }
 0x3ff PF: > { %s16_s18 = sadd.s32 1, %s872_s18  }
 0x400   : > { %p13_p4 = scmp.ge.s32.totalorder %s16_s18, 4  }
 0x402   :  { %15 = sbr.rel (!%p13_p4) target bundleno = 1 (0x1), region = 78 }

</bundles_post_ra>
